<compile_context>
chip_gen: v6e
topology: v6e:2x2x1
jax: 0.10.0
libtpu: 0.0.40
codegen_flags: <defaults>
</compile_context>

<pallas_src>
import functools

import jax
import jax.numpy as jnp
from jax.experimental import pallas as pl
from jax.experimental.pallas import tpu as pltpu

LANE = 128          # vreg lane width
SUBLANE_BF16 = 16   # bf16 sublane packing (pad pooled/graph rows to this)


def _round_up(v, m):
    return ((v + m - 1) // m) * m


def _pad2(a, rows, cols, dtype):
    out = jnp.zeros((rows, cols), dtype)
    return out.at[: a.shape[0], : a.shape[1]].set(a.astype(dtype))


# ----------------------------------------------------------------------------
# Fused kernel: one grid step per GIN layer; head fused into the last step.
# ----------------------------------------------------------------------------
def _gin_fused_kernel(adj_ref, x_ref, pool_ref, invc_ref,
                      w1_ref, w2_ref, vec_ref,
                      hw1_ref, hw2_ref, hb1_ref, hb2_ref,
                      out_ref, xact_ref):
    bf16 = jnp.bfloat16
    l = pl.program_id(0)

    @pl.when(l == 0)
    def _():
        xact_ref[...] = x_ref[...]          # load input features once

    # --- GIN layer l ---------------------------------------------------
    # neighbor sum-aggregation + (1+eps)*self term folded into adj (eps==0)
    adj = adj_ref[...]                      # re-read per step: bounded live range
    agg = jnp.dot(adj, xact_ref[...], preferred_element_type=jnp.float32)
    # MLP: Linear -> ReLU -> Linear -> ReLU   (bf16 MXU, f32 accumulate)
    h = jnp.dot(agg.astype(bf16), w1_ref[...],
                preferred_element_type=jnp.float32) + vec_ref[0:1, :]
    h = jnp.maximum(h, 0.0)
    h = jnp.dot(h.astype(bf16), w2_ref[...],
                preferred_element_type=jnp.float32) + vec_ref[1:2, :]
    h = jnp.maximum(h, 0.0)
    # folded eval-mode BatchNorm1d: single f32 FMA
    h = h * vec_ref[2:3, :] + vec_ref[3:4, :]
    x_new = h.astype(bf16)
    xact_ref[...] = x_new                   # carry activation to next grid step

    # --- head (only on the last layer step) ------------------------------
    @pl.when(l == pl.num_programs(0) - 1)
    def _():
        # global_mean_pool: 0/1 sum matmul (exact in bf16) + f32 1/|V_g|
        pooled = jnp.dot(pool_ref[...], x_new, preferred_element_type=jnp.float32)
        pooled = pooled * invc_ref[...]
        hh = jnp.dot(pooled.astype(bf16), hw1_ref[...],
                     preferred_element_type=jnp.float32) + hb1_ref[...]
        hh = jnp.maximum(hh, 0.0)
        # dropout(p=0.5) is identity in eval mode
        # padded class lanes carry bias -1e30 (weights 0) -> excluded from softmax
        logits = jnp.dot(hh.astype(bf16), hw2_ref[...],
                         preferred_element_type=jnp.float32) + hb2_ref[...]
        m = jnp.max(logits, axis=-1, keepdims=True)
        shifted = logits - m
        lse = jnp.log(jnp.sum(jnp.exp(shifted), axis=-1, keepdims=True))
        out_ref[...] = shifted - lse


# ----------------------------------------------------------------------------
# One-time host-side prep: fold BN, pad, cast to bf16, stack per-layer params.
# ----------------------------------------------------------------------------
def pack_params(params, num_features, hidden, num_classes):
    bf16 = jnp.bfloat16
    d_pad = _round_up(max(num_features, hidden), LANE)
    c_pad = _round_up(num_classes, LANE)

    layers = [params["conv1"]] + list(params["convs"])
    L = len(layers)
    w1s = jnp.zeros((L, d_pad, d_pad), bf16)
    w2s = jnp.zeros((L, d_pad, d_pad), bf16)
    vecs = jnp.zeros((L, 8, d_pad), jnp.float32)   # rows: b1, b2, bn_scale, bn_shift
    for i, p in enumerate(layers):
        w1s = w1s.at[i, : p["w1"].shape[0], : p["w1"].shape[1]].set(p["w1"].astype(bf16))
        w2s = w2s.at[i, : p["w2"].shape[0], : p["w2"].shape[1]].set(p["w2"].astype(bf16))
        scale = p["gamma"] * jax.lax.rsqrt(p["var"] + 1e-5)
        shift = p["beta"] - p["mean"] * scale
        h = p["w1"].shape[1]
        vecs = vecs.at[i, 0, :h].set(p["b1"][0])
        vecs = vecs.at[i, 1, :h].set(p["b2"][0])
        vecs = vecs.at[i, 2, :h].set(scale[0])
        vecs = vecs.at[i, 3, :h].set(shift[0])

    hp = params["head"]
    hw1 = _pad2(hp["w1"], d_pad, d_pad, bf16)
    hw2 = _pad2(hp["w2"], d_pad, c_pad, bf16)
    hb1 = _pad2(hp["b1"], 1, d_pad, jnp.float32)
    # -1e30 on padded class lanes => no explicit softmax mask needed in-kernel
    hb2 = jnp.full((1, c_pad), -1e30, jnp.float32).at[:, :num_classes].set(hp["b2"][0])
    return {"w1": w1s, "w2": w2s, "vec": vecs,
            "hw1": hw1, "hw2": hw2, "hb1": hb1, "hb2": hb2}


# ----------------------------------------------------------------------------
# Jitted forward: per-graph padding fuses under jit, then one pallas_call.
# ----------------------------------------------------------------------------
@functools.partial(jax.jit, static_argnames=("num_classes",))
def gin0_forward(x, adj, pool01, counts, packed, *, num_classes):
    bf16 = jnp.bfloat16
    L, d_pad, _ = packed["w1"].shape
    c_pad = packed["hw2"].shape[1]
    n = x.shape[0]
    g = pool01.shape[0]
    n_pad = _round_up(n, LANE)        # pack multiple small graphs per 128-node slab
    g_pad = _round_up(g, SUBLANE_BF16)

    # GIN0 / train_eps=False => eps == 0; fold (1+eps)*I self term into adjacency
    adj_eff = adj + jnp.eye(n, dtype=adj.dtype)
    adj_p = _pad2(adj_eff, n_pad, n_pad, bf16)
    x_p = _pad2(x, n_pad, d_pad, bf16)
    pool_p = _pad2(pool01, g_pad, n_pad, bf16)             # unnormalized 0/1 sums
    invc = jnp.ones((g_pad, 1), jnp.float32).at[:g, 0].set(1.0 / counts)

    const2d = lambda shape: pl.BlockSpec(shape, lambda l: (0, 0))
    per_layer = lambda shape: pl.BlockSpec((None,) + shape, lambda l: (l, 0, 0))

    out_pad = pl.pallas_call(
        _gin_fused_kernel,
        out_shape=jax.ShapeDtypeStruct((g_pad, c_pad), jnp.float32),
        grid_spec=pltpu.PrefetchScalarGridSpec(
            num_scalar_prefetch=0,
            grid=(L,),                                      # one step per GIN layer
            in_specs=[
                const2d((n_pad, n_pad)),                    # adj (resident)
                const2d((n_pad, d_pad)),                    # x features (read at l==0)
                const2d((g_pad, n_pad)),                    # pool 0/1 matrix
                const2d((g_pad, 1)),                        # 1/|V_g| (f32)
                per_layer((d_pad, d_pad)),                  # w1 stack  [L,D,D]
                per_layer((d_pad, d_pad)),                  # w2 stack  [L,D,D]
                per_layer((8, d_pad)),                      # b1/b2/scale/shift [L,8,D]
                const2d((d_pad, d_pad)),                    # head w1
                const2d((d_pad, c_pad)),                    # head w2
                const2d((1, d_pad)),                        # head b1
                const2d((1, c_pad)),                        # head b2 (padded lanes -1e30)
            ],
            out_specs=const2d((g_pad, c_pad)),
            scratch_shapes=[pltpu.VMEM((n_pad, d_pad), bf16)],   # resident activation
        ),
        compiler_params=pltpu.CompilerParams(
            dimension_semantics=("arbitrary",),             # layer axis carries state
            vmem_limit_bytes=32 * 1024 * 1024),
    )(adj_p, x_p, pool_p, invc,
      packed["w1"], packed["w2"], packed["vec"],
      packed["hw1"], packed["hw2"], packed["hb1"], packed["hb2"])
    return out_pad[:g, :num_classes]


# ----------------------------------------------------------------------------
# Deterministic parameter init (shapes from the module __init__)
# ----------------------------------------------------------------------------
def _linear_init(key, fan_in, fan_out):
    k1, k2 = jax.random.split(key)
    bound = 1.0 / (fan_in ** 0.5)
    w = jax.random.uniform(k1, (fan_in, fan_out), jnp.float32, -bound, bound)
    b = jax.random.uniform(k2, (1, fan_out), jnp.float32, -bound, bound)
    return w, b


def _gin_params(key, in_dim, hidden):
    k1, k2 = jax.random.split(key)
    w1, b1 = _linear_init(k1, in_dim, hidden)
    w2, b2 = _linear_init(k2, hidden, hidden)
    return {
        "w1": w1, "b1": b1, "w2": w2, "b2": b2,
        "gamma": jnp.ones((1, hidden), jnp.float32),   # BN affine
        "beta": jnp.zeros((1, hidden), jnp.float32),
        "mean": jnp.zeros((1, hidden), jnp.float32),   # BN running stats
        "var": jnp.ones((1, hidden), jnp.float32),
    }


def make_params(key, num_features, num_classes, num_layers, hidden):
    keys = jax.random.split(key, num_layers + 2)
    params = {"conv1": _gin_params(keys[0], num_features, hidden), "convs": []}
    for i in range(num_layers - 1):
        params["convs"].append(_gin_params(keys[1 + i], hidden, hidden))
    w1, b1 = _linear_init(keys[num_layers], hidden, hidden)
    w2, b2 = _linear_init(keys[num_layers + 1], hidden, num_classes)
    params["head"] = {"w1": w1, "b1": b1, "w2": w2, "b2": b2}
    return params


# ----------------------------------------------------------------------------
# Pure-JAX reference mirroring the kernel's bf16-matmul / f32-accum math
# ----------------------------------------------------------------------------
def _ref_forward(x, adj, pool01, counts, params):
    bf16 = jnp.bfloat16
    adj_eff = (adj + jnp.eye(x.shape[0], dtype=adj.dtype)).astype(bf16)
    xx = x.astype(bf16)
    for p in [params["conv1"]] + list(params["convs"]):
        agg = jnp.dot(adj_eff, xx, preferred_element_type=jnp.float32)
        h = jnp.dot(agg.astype(bf16), p["w1"].astype(bf16),
                    preferred_element_type=jnp.float32) + p["b1"]
        h = jnp.maximum(h, 0.0)
        h = jnp.dot(h.astype(bf16), p["w2"].astype(bf16),
                    preferred_element_type=jnp.float32) + p["b2"]
        h = jnp.maximum(h, 0.0)
        scale = p["gamma"] * jax.lax.rsqrt(p["var"] + 1e-5)
        shift = p["beta"] - p["mean"] * scale
        xx = (h * scale + shift).astype(bf16)
    pooled = jnp.dot(pool01.astype(bf16), xx,
                     preferred_element_type=jnp.float32) / counts[:, None]
    hp = params["head"]
    h = jnp.maximum(jnp.dot(pooled.astype(bf16), hp["w1"].astype(bf16),
                            preferred_element_type=jnp.float32) + hp["b1"], 0.0)
    logits = jnp.dot(h.astype(bf16), hp["w2"].astype(bf16),
                     preferred_element_type=jnp.float32) + hp["b2"]
    return jax.nn.log_softmax(logits, axis=-1)


# ----------------------------------------------------------------------------
if __name__ == "__main__":
    num_features = 16     # dataset.num_features
    num_classes = 6       # dataset.num_classes
    num_layers = 3        # conv1 + 2 extra GINConvs
    hidden = 32

    # --- small multi-graph batch (graphs packed into one node slab) -----
    sizes = [10, 14, 17]
    num_nodes = sum(sizes)          # 41
    num_graphs = len(sizes)

    key = jax.random.PRNGKey(0)
    k_x, k_e, k_p = jax.random.split(key, 3)

    x = jax.random.normal(k_x, (num_nodes, num_features), jnp.float32)
    batch = jnp.concatenate(
        [jnp.full((s,), i, jnp.int32) for i, s in enumerate(sizes)])

    # random directed edges, kept within each graph
    edge_chunks = []
    offs = 0
    keys_e = jax.random.split(k_e, num_graphs)
    for i, s in enumerate(sizes):
        edge_chunks.append(jax.random.randint(keys_e[i], (2, 3 * s), offs, offs + s))
        offs += s
    edge_index = jnp.concatenate(edge_chunks, axis=1)
    src, dst = edge_index[0], edge_index[1]

    # dense adjacency for sum-aggregation: A[target, source] += 1
    adj = jnp.zeros((num_nodes, num_nodes), jnp.float32).at[dst, src].add(1.0)

    # unnormalized pooling matrix (0/1 membership); mean applied in f32 in-kernel
    counts = jnp.array(sizes, jnp.float32)
    pool01 = (batch[None, :] == jnp.arange(num_graphs)[:, None]).astype(jnp.float32)

    params = make_params(k_p, num_features, num_classes, num_layers, hidden)
    packed = pack_params(params, num_features, hidden, num_classes)   # one-time prep

    out = gin0_forward(x, adj, pool01, counts, packed, num_classes=num_classes)
    out = jax.block_until_ready(out)

    ref = _ref_forward(x, adj, pool01, counts, params)
    assert out.shape == (num_graphs, num_classes)
    assert jnp.allclose(out, ref, atol=5e-3, rtol=5e-3), "mismatch vs JAX reference"
    assert jnp.allclose(jnp.sum(jnp.exp(out), axis=-1), 1.0, atol=1e-3)

    print("KERNEL_OK")
</pallas_src>

<mosaic_0001>
module attributes {stable_mosaic.version = 11 : i64} {
  func.func @_gin_fused_kernel(%arg0: i32, %arg1: memref<128x128xbf16, #tpu.memory_space<vmem>>, %arg2: memref<128x128xbf16, #tpu.memory_space<vmem>>, %arg3: memref<16x128xbf16, #tpu.memory_space<vmem>>, %arg4: memref<16x1xf32, #tpu.memory_space<vmem>>, %arg5: memref<1x128x128xbf16, #tpu.memory_space<vmem>>, %arg6: memref<1x128x128xbf16, #tpu.memory_space<vmem>>, %arg7: memref<1x8x128xf32, #tpu.memory_space<vmem>>, %arg8: memref<128x128xbf16, #tpu.memory_space<vmem>>, %arg9: memref<128x128xbf16, #tpu.memory_space<vmem>>, %arg10: memref<1x128xf32, #tpu.memory_space<vmem>>, %arg11: memref<1x128xf32, #tpu.memory_space<vmem>>, %arg12: memref<16x128xf32, #tpu.memory_space<vmem>>, %arg13: memref<128x128xbf16, #tpu.memory_space<vmem>>) attributes {dimension_semantics = [#tpu.dimension_semantics<arbitrary>], iteration_bounds = array<i64: 3>, scalar_prefetch = 0 : i64, scratch_operands = 1 : i64, tpu.core_type = #tpu.core_type<tc>, window_params = [{pipeline_mode = #tpu.pipeline_mode<synchronous>, transform_indices = @transform_0, window_bounds = array<i64: 128, 128>}, {pipeline_mode = #tpu.pipeline_mode<synchronous>, transform_indices = @transform_1, window_bounds = array<i64: 128, 128>}, {pipeline_mode = #tpu.pipeline_mode<synchronous>, transform_indices = @transform_2, window_bounds = array<i64: 16, 128>}, {pipeline_mode = #tpu.pipeline_mode<synchronous>, transform_indices = @transform_3, window_bounds = array<i64: 16, 1>}, {transform_indices = @transform_4, window_bounds = array<i64: 1, 128, 128>}, {transform_indices = @transform_5, window_bounds = array<i64: 1, 128, 128>}, {transform_indices = @transform_6, window_bounds = array<i64: 1, 8, 128>}, {pipeline_mode = #tpu.pipeline_mode<synchronous>, transform_indices = @transform_7, window_bounds = array<i64: 128, 128>}, {pipeline_mode = #tpu.pipeline_mode<synchronous>, transform_indices = @transform_8, window_bounds = array<i64: 128, 128>}, {pipeline_mode = #tpu.pipeline_mode<synchronous>, transform_indices = @transform_9, window_bounds = array<i64: 1, 128>}, {pipeline_mode = #tpu.pipeline_mode<synchronous>, transform_indices = @transform_10, window_bounds = array<i64: 1, 128>}, {pipeline_mode = #tpu.pipeline_mode<synchronous>, transform_indices = @transform_11, window_bounds = array<i64: 16, 128>}]} {
    %c0_i32 = arith.constant 0 : i32
    %0 = arith.cmpi eq, %arg0, %c0_i32 : i32
    %1 = arith.extui %0 : i1 to i32
    %c0_i32_0 = arith.constant 0 : i32
    %2 = arith.cmpi ne, %1, %c0_i32_0 : i32
    scf.if %2 {
      %c0_26 = arith.constant 0 : index
      %c0_27 = arith.constant 0 : index
      %39 = vector.load %arg2[%c0_26, %c0_27] : memref<128x128xbf16, #tpu.memory_space<vmem>>, vector<128x128xbf16>
      %c0_28 = arith.constant 0 : index
      %c0_29 = arith.constant 0 : index
      %40 = vector.load %arg13[%c0_28, %c0_29] : memref<128x128xbf16, #tpu.memory_space<vmem>>, vector<128x128xbf16>
      tpu.vector_store %arg13[%c0_28, %c0_29], %39 {strides = array<i32>} : memref<128x128xbf16, #tpu.memory_space<vmem>>, vector<128x128xbf16>,
    } else {
    }
    %c0 = arith.constant 0 : index
    %c0_1 = arith.constant 0 : index
    %3 = vector.load %arg1[%c0, %c0_1] : memref<128x128xbf16, #tpu.memory_space<vmem>>, vector<128x128xbf16>
    %c0_2 = arith.constant 0 : index
    %c0_3 = arith.constant 0 : index
    %4 = vector.load %arg13[%c0_2, %c0_3] : memref<128x128xbf16, #tpu.memory_space<vmem>>, vector<128x128xbf16>
    %cst = arith.constant dense<0.000000e+00> : vector<128x128xf32>
    %5 = tpu.matmul %3, %4, %cst {dimension_numbers = #tpu.dot_dimension_numbers<[1], [0], [0], [1], [0, 0, 1, 1], [], []>} : vector<128x128xbf16>, vector<128x128xbf16>, vector<128x128xf32> -> vector<128x128xf32>
    %6 = arith.truncf %5 : vector<128x128xf32> to vector<128x128xbf16>
    %c0_4 = arith.constant 0 : index
    %c0_5 = arith.constant 0 : index
    %c0_6 = arith.constant 0 : index
    %7 = vector.load %arg5[%c0_4, %c0_5, %c0_6] : memref<1x128x128xbf16, #tpu.memory_space<vmem>>, vector<1x128x128xbf16>
    %8 = vector.shape_cast %7 : vector<1x128x128xbf16> to vector<128x128xbf16>
    %cst_7 = arith.constant dense<0.000000e+00> : vector<128x128xf32>
    %9 = tpu.matmul %6, %8, %cst_7 {dimension_numbers = #tpu.dot_dimension_numbers<[1], [0], [0], [1], [0, 0, 1, 1], [], []>} : vector<128x128xbf16>, vector<128x128xbf16>, vector<128x128xf32> -> vector<128x128xf32>
    %c0_8 = arith.constant 0 : index
    %c0_9 = arith.constant 0 : index
    %c0_10 = arith.constant 0 : index
    %10 = vector.load %arg7[%c0_8, %c0_9, %c0_10] : memref<1x8x128xf32, #tpu.memory_space<vmem>>, vector<1x1x128xf32>
    %11 = vector.shape_cast %10 : vector<1x1x128xf32> to vector<1x128xf32>
    %12 = vector.broadcast %11 : vector<1x128xf32> to vector<128x128xf32>
    %13 = arith.addf %9, %12 : vector<128x128xf32>
    %cst_11 = arith.constant 0.000000e+00 : f32
    %14 = vector.broadcast %cst_11 : f32 to vector<128x128xf32>
    %15 = arith.maximumf %13, %14 : vector<128x128xf32>
    %16 = arith.truncf %15 : vector<128x128xf32> to vector<128x128xbf16>
    %c0_12 = arith.constant 0 : index
    %c0_13 = arith.constant 0 : index
    %c0_14 = arith.constant 0 : index
    %17 = vector.load %arg6[%c0_12, %c0_13, %c0_14] : memref<1x128x128xbf16, #tpu.memory_space<vmem>>, vector<1x128x128xbf16>
    %18 = vector.shape_cast %17 : vector<1x128x128xbf16> to vector<128x128xbf16>
    %cst_15 = arith.constant dense<0.000000e+00> : vector<128x128xf32>
    %19 = tpu.matmul %16, %18, %cst_15 {dimension_numbers = #tpu.dot_dimension_numbers<[1], [0], [0], [1], [0, 0, 1, 1], [], []>} : vector<128x128xbf16>, vector<128x128xbf16>, vector<128x128xf32> -> vector<128x128xf32>
    %c0_16 = arith.constant 0 : index
    %c1 = arith.constant 1 : index
    %c0_17 = arith.constant 0 : index
    %20 = vector.load %arg7[%c0_16, %c1, %c0_17] : memref<1x8x128xf32, #tpu.memory_space<vmem>>, vector<1x1x128xf32>
    %21 = vector.shape_cast %20 : vector<1x1x128xf32> to vector<1x128xf32>
    %22 = vector.broadcast %21 : vector<1x128xf32> to vector<128x128xf32>
    %23 = arith.addf %19, %22 : vector<128x128xf32>
    %cst_18 = arith.constant 0.000000e+00 : f32
    %24 = vector.broadcast %cst_18 : f32 to vector<128x128xf32>
    %25 = arith.maximumf %23, %24 : vector<128x128xf32>
    %c0_19 = arith.constant 0 : index
    %c2 = arith.constant 2 : index
    %c0_20 = arith.constant 0 : index
    %26 = vector.load %arg7[%c0_19, %c2, %c0_20] : memref<1x8x128xf32, #tpu.memory_space<vmem>>, vector<1x1x128xf32>
    %27 = vector.shape_cast %26 : vector<1x1x128xf32> to vector<1x128xf32>
    %28 = vector.broadcast %27 : vector<1x128xf32> to vector<128x128xf32>
    %29 = arith.mulf %25, %28 : vector<128x128xf32>
    %c0_21 = arith.constant 0 : index
    %c3 = arith.constant 3 : index
    %c0_22 = arith.constant 0 : index
    %30 = vector.load %arg7[%c0_21, %c3, %c0_22] : memref<1x8x128xf32, #tpu.memory_space<vmem>>, vector<1x1x128xf32>
    %31 = vector.shape_cast %30 : vector<1x1x128xf32> to vector<1x128xf32>
    %32 = vector.broadcast %31 : vector<1x128xf32> to vector<128x128xf32>
    %33 = arith.addf %29, %32 : vector<128x128xf32>
    %34 = arith.truncf %33 : vector<128x128xf32> to vector<128x128xbf16>
    %c0_23 = arith.constant 0 : index
    %c0_24 = arith.constant 0 : index
    %35 = vector.load %arg13[%c0_23, %c0_24] : memref<128x128xbf16, #tpu.memory_space<vmem>>, vector<128x128xbf16>
    tpu.vector_store %arg13[%c0_23, %c0_24], %34 {strides = array<i32>} : memref<128x128xbf16, #tpu.memory_space<vmem>>, vector<128x128xbf16>,
    %c2_i32 = arith.constant 2 : i32
    %36 = arith.cmpi eq, %arg0, %c2_i32 : i32
    %37 = arith.extui %36 : i1 to i32
    %c0_i32_25 = arith.constant 0 : i32
    %38 = arith.cmpi ne, %37, %c0_i32_25 : i32
    scf.if %38 {
      %c0_26 = arith.constant 0 : index
      %c0_27 = arith.constant 0 : index
      %39 = vector.load %arg3[%c0_26, %c0_27] : memref<16x128xbf16, #tpu.memory_space<vmem>>, vector<16x128xbf16>
      %cst_28 = arith.constant dense<0.000000e+00> : vector<16x128xf32>
      %40 = tpu.matmul %39, %34, %cst_28 {dimension_numbers = #tpu.dot_dimension_numbers<[1], [0], [0], [1], [0, 0, 1, 1], [], []>} : vector<16x128xbf16>, vector<128x128xbf16>, vector<16x128xf32> -> vector<16x128xf32>
      %c0_29 = arith.constant 0 : index
      %c0_30 = arith.constant 0 : index
      %41 = vector.load %arg4[%c0_29, %c0_30] : memref<16x1xf32, #tpu.memory_space<vmem>>, vector<16x1xf32>
      %42 = vector.broadcast %41 : vector<16x1xf32> to vector<16x128xf32>
      %43 = arith.mulf %40, %42 : vector<16x128xf32>
      %44 = arith.truncf %43 : vector<16x128xf32> to vector<16x128xbf16>
      %c0_31 = arith.constant 0 : index
      %c0_32 = arith.constant 0 : index
      %45 = vector.load %arg8[%c0_31, %c0_32] : memref<128x128xbf16, #tpu.memory_space<vmem>>, vector<128x128xbf16>
      %cst_33 = arith.constant dense<0.000000e+00> : vector<16x128xf32>
      %46 = tpu.matmul %44, %45, %cst_33 {dimension_numbers = #tpu.dot_dimension_numbers<[1], [0], [0], [1], [0, 0, 1, 1], [], []>} : vector<16x128xbf16>, vector<128x128xbf16>, vector<16x128xf32> -> vector<16x128xf32>
      %c0_34 = arith.constant 0 : index
      %c0_35 = arith.constant 0 : index
      %47 = vector.load %arg10[%c0_34, %c0_35] : memref<1x128xf32, #tpu.memory_space<vmem>>, vector<1x128xf32>
      %48 = vector.broadcast %47 : vector<1x128xf32> to vector<16x128xf32>
      %49 = arith.addf %46, %48 : vector<16x128xf32>
      %cst_36 = arith.constant 0.000000e+00 : f32
      %50 = vector.broadcast %cst_36 : f32 to vector<16x128xf32>
      %51 = arith.maximumf %49, %50 : vector<16x128xf32>
      %52 = arith.truncf %51 : vector<16x128xf32> to vector<16x128xbf16>
      %c0_37 = arith.constant 0 : index
      %c0_38 = arith.constant 0 : index
      %53 = vector.load %arg9[%c0_37, %c0_38] : memref<128x128xbf16, #tpu.memory_space<vmem>>, vector<128x128xbf16>
      %cst_39 = arith.constant dense<0.000000e+00> : vector<16x128xf32>
      %54 = tpu.matmul %52, %53, %cst_39 {dimension_numbers = #tpu.dot_dimension_numbers<[1], [0], [0], [1], [0, 0, 1, 1], [], []>} : vector<16x128xbf16>, vector<128x128xbf16>, vector<16x128xf32> -> vector<16x128xf32>
      %c0_40 = arith.constant 0 : index
      %c0_41 = arith.constant 0 : index
      %55 = vector.load %arg11[%c0_40, %c0_41] : memref<1x128xf32, #tpu.memory_space<vmem>>, vector<1x128xf32>
      %56 = vector.broadcast %55 : vector<1x128xf32> to vector<16x128xf32>
      %57 = arith.addf %54, %56 : vector<16x128xf32>
      %cst_42 = arith.constant dense<0xFF800000> : vector<16xf32>
      %58 = vector.multi_reduction <maximumf>, %57, %cst_42 [1] : vector<16x128xf32> to vector<16xf32>
      %59 = vector.shape_cast %58 : vector<16xf32> to vector<16x1xf32>
      %60 = vector.broadcast %59 : vector<16x1xf32> to vector<16x128xf32>
      %61 = arith.subf %57, %60 : vector<16x128xf32>
      %62 = math.exp %61 : vector<16x128xf32>
      %cst_43 = arith.constant dense<0.000000e+00> : vector<16xf32>
      %63 = vector.multi_reduction <add>, %62, %cst_43 [1] : vector<16x128xf32> to vector<16xf32>
      %64 = vector.shape_cast %63 : vector<16xf32> to vector<16x1xf32>
      %65 = math.log %64 : vector<16x1xf32>
      %66 = vector.broadcast %65 : vector<16x1xf32> to vector<16x128xf32>
      %67 = arith.subf %61, %66 : vector<16x128xf32>
      %c0_44 = arith.constant 0 : index
      %c0_45 = arith.constant 0 : index
      %68 = vector.load %arg12[%c0_44, %c0_45] : memref<16x128xf32, #tpu.memory_space<vmem>>, vector<16x128xf32>
      tpu.vector_store %arg12[%c0_44, %c0_45], %67 {strides = array<i32>} : memref<16x128xf32, #tpu.memory_space<vmem>>, vector<16x128xf32>,
    } else {
    }
    return
  }
  func.func @transform_0(%arg0: i32) -> (i32, i32) {
    %c0_i32 = arith.constant 0 : i32
    %c0_i32_0 = arith.constant 0 : i32
    %c0_i32_1 = arith.constant 0 : i32
    return %c0_i32, %c0_i32_0 : i32, i32
  }
  func.func @transform_1(%arg0: i32) -> (i32, i32) {
    %c0_i32 = arith.constant 0 : i32
    %c0_i32_0 = arith.constant 0 : i32
    %c0_i32_1 = arith.constant 0 : i32
    return %c0_i32, %c0_i32_0 : i32, i32
  }
  func.func @transform_2(%arg0: i32) -> (i32, i32) {
    %c0_i32 = arith.constant 0 : i32
    %c0_i32_0 = arith.constant 0 : i32
    %c0_i32_1 = arith.constant 0 : i32
    return %c0_i32, %c0_i32_0 : i32, i32
  }
  func.func @transform_3(%arg0: i32) -> (i32, i32) {
    %c0_i32 = arith.constant 0 : i32
    %c0_i32_0 = arith.constant 0 : i32
    %c0_i32_1 = arith.constant 0 : i32
    return %c0_i32, %c0_i32_0 : i32, i32
  }
  func.func @transform_4(%arg0: i32) -> (i32, i32, i32) {
    %c0_i32 = arith.constant 0 : i32
    %c0_i32_0 = arith.constant 0 : i32
    %c0_i32_1 = arith.constant 0 : i32
    return %arg0, %c0_i32, %c0_i32_0 : i32, i32, i32
  }
  func.func @transform_5(%arg0: i32) -> (i32, i32, i32) {
    %c0_i32 = arith.constant 0 : i32
    %c0_i32_0 = arith.constant 0 : i32
    %c0_i32_1 = arith.constant 0 : i32
    return %arg0, %c0_i32, %c0_i32_0 : i32, i32, i32
  }
  func.func @transform_6(%arg0: i32) -> (i32, i32, i32) {
    %c0_i32 = arith.constant 0 : i32
    %c0_i32_0 = arith.constant 0 : i32
    %c0_i32_1 = arith.constant 0 : i32
    return %arg0, %c0_i32, %c0_i32_0 : i32, i32, i32
  }
  func.func @transform_7(%arg0: i32) -> (i32, i32) {
    %c0_i32 = arith.constant 0 : i32
    %c0_i32_0 = arith.constant 0 : i32
    %c0_i32_1 = arith.constant 0 : i32
    return %c0_i32, %c0_i32_0 : i32, i32
  }
  func.func @transform_8(%arg0: i32) -> (i32, i32) {
    %c0_i32 = arith.constant 0 : i32
    %c0_i32_0 = arith.constant 0 : i32
    %c0_i32_1 = arith.constant 0 : i32
    return %c0_i32, %c0_i32_0 : i32, i32
  }
  func.func @transform_9(%arg0: i32) -> (i32, i32) {
    %c0_i32 = arith.constant 0 : i32
    %c0_i32_0 = arith.constant 0 : i32
    %c0_i32_1 = arith.constant 0 : i32
    return %c0_i32, %c0_i32_0 : i32, i32
  }
  func.func @transform_10(%arg0: i32) -> (i32, i32) {
    %c0_i32 = arith.constant 0 : i32
    %c0_i32_0 = arith.constant 0 : i32
    %c0_i32_1 = arith.constant 0 : i32
    return %c0_i32, %c0_i32_0 : i32, i32
  }
  func.func @transform_11(%arg0: i32) -> (i32, i32) {
    %c0_i32 = arith.constant 0 : i32
    %c0_i32_0 = arith.constant 0 : i32
    %c0_i32_1 = arith.constant 0 : i32
    return %c0_i32, %c0_i32_0 : i32, i32
  }
}

</mosaic_0001>

<bundles_post_ra>
// kernel: gin0_forward.1
= control target key start
LH: loop header
LB: loop body
LE: loop exit
PB: predicated region body
PF: predicated region fallthrough
CT: control target
= control target key end

     0   :  { %16 = vsyncpa [#allocation4], 0  ;;  %s2552_s0 = inlined_call_operand.vmem [shape: bf16[128,128], index: 0, kind: input, shape index: {}]   ;;  %s2553_s1 = inlined_call_operand.vmem [shape: bf16[128,128], index: 1, kind: input, shape index: {}]   ;;  %s2554_s2 = inlined_call_operand.vmem [shape: bf16[16,128], index: 2, kind: input, shape index: {}]   ;;  %s2555_s3 = inlined_call_operand.vmem [shape: f32[16,1], index: 3, kind: input, shape index: {}]   ;;  %s2556_s4 = inlined_call_operand.vmem [shape: bf16[3,128,128], index: 4, kind: input, shape index: {}]   ;;  %s2557_s5 = inlined_call_operand.hbm [shape: bf16[3,128,128], index: 5, kind: input, shape index: {}]   ;;  %s2558_s6 = inlined_call_operand.vmem [shape: f32[3,8,128], index: 6, kind: input, shape index: {}]   ;;  %s2559_s7 = inlined_call_operand.vmem [shape: bf16[128,128], index: 7, kind: input, shape index: {}]   ;;  %s2560_s8 = inlined_call_operand.vmem [shape: bf16[128,128], index: 8, kind: input, shape index: {}]   ;;  %s2561_s9 = inlined_call_operand.vmem [shape: f32[1,128], index: 9, kind: input, shape index: {}]   ;;  %s2562_s10 = inlined_call_operand.vmem [shape: f32[1,128], index: 10, kind: input, shape index: {}]   ;;  %s2563_s11 = inlined_call_operand.vmem [shape: f32[16,128], index: 11, kind: output, shape index: {}]  }
   0x1   :  { %18 = vsyncpa [#allocation4 + $0x1], 0  ;;  %s2203_s17 = smov 0   ;;  %s2205_s18 = smov 0  }
   0x2   :  { %s2207_s19 = smov 0   ;;  %s2209_s20 = smov 0  }
   0x3 LB: > { %s2222_s21 = sadd.s32 4294967295, %s2135_s20   ;;  %s2225_s22 = sadd.s32 1, %s2135_s20   ;;  %s2135_s20 = sphi %s2209_s20, %s2574_s20   ;;  %s2131_s19 = sphi %s2207_s19, %s2573_s19   ;;  %s2127_s18 = sphi %s2205_s18, %s2572_s18   ;;  %s2123_s17 = sphi %s2203_s17, %s2571_s17  }
   0x4   : > { %s138_s23 = ssub.s32 %s2135_s20, %s2225_s22  ;;  %s141_s24 = sadd.s32 1, %s2131_s19 }
   0x5   : > { %p139_p0 = scmp.eq.s32.totalorder %s138_s23, 0  ;;  %p148_p1 = scmp.ne.s32.totalorder %s2131_s19, %s2127_s18 }
   0x6   : > { %p149_p2 = scmp.eq.s32.totalorder %s2135_s20, 0  ;;  %p154_p3 = scmp.ne.s32.totalorder %s2127_s18, %s2123_s17 }
   0x7   : > { %s2235_s25 = scalar_select %p139_p0, %s2131_s19, %s141_s24  }
   0x8   : > { %p150_p4 = por %p149_p2, %p148_p1  ;;  %p155_p5 = scmp.eq.s32.totalorder %s2222_s21, 0 }
   0x9   : > { %2565 = sst [smem:[#allocation6_spill]] %s2235_s25  ;;  %p1977_p6 = scmp.lt.s32.totalorder %s2135_s20, 3 }
   0xa   : > { %p2239_p7 = por %p155_p5, %p154_p3  ;;  %s341_s27 = sand.u32 1, %s2131_s19  }
   0xb   : > { %s1576_s28 = sshll.u32 %s341_s27, 6  ;;  %s1659_s29 = sshll.u32 %s2135_s20, 10 }
   0xc   : > { %s2566_s26 = scalar_select %p2239_p7, 1, 0 }
   0xd   : > { %s2248_s13 = scalar_lea.hbm %s2557_s5, %s1659_s29  ;;  %s345_s14 = scalar_lea.vmem [#allocation3], %s1576_s28 }
   0xe   : > { %s352_s15 = sshll.u32 %s345_s14, 4  ;;  %p2252_p8 = pnand %p1977_p6, %p150_p4  ;;  %s2250_s15 = int_to_ptr.vmem [resolvable:$true] %s352_s15 }
   0xf   : > { %s2257_s17 = scalar_lea.sflag [#allocation4], %s341_s27  ;;  %s2073_s23 = scalar_lea.hbm %s2248_s13, 1024 }
  0x10   : > { %p2074_p10 = scmp.ne.s32.totalorder %s2248_s13, %s2073_s23  ;;  %p2075_p11 = pneg %p2252_p8 }
  0x11   : > { %s2078_s28 = scalar_lea.hbm %s2557_s5, 3072  ;;  %p2079_p0 = scmp.lt.s32.totalorder %s2248_s13, %s2557_s5 }
  0x12   : > { %p2076_p12 = pnand %p2075_p11, %p2074_p10  ;;  %p2080_p1 = scmp.lt.s32.totalorder %s2078_s28, %s2073_s23 }
  0x14   : > { %p2077_p13 = pneg %p2076_p12  ;;  %p2081_p2 = por %p2080_p1, %p2079_p0 }
  0x16   : > { %p2082_p3 = pnand %p2081_p2, %p2077_p13 }
  0x18   : > { %2085 = shalt.err (!%p2082_p3)
}
  0x19   : > { %s2086_s27 = scalar_lea.vmem %s2250_s15, 1024  ;;  %s2137_s14 = smov [#allocation3]  }
  0x1a   : > { %p2087_p4 = scmp.ne.s32.totalorder %s2250_s15, %s2086_s27  ;;  %s2091_s25 = sshll.u32 %s2137_s14, 4  ;;  %s2092_s25 = int_to_ptr.vmem [resolvable:$false] %s2091_s25 }
  0x1b   : > { %s2093_s24 = scalar_lea.vmem %s2092_s25, 2048  ;;  %p2094_p10 = scmp.lt.s32.totalorder %s2250_s15, %s2092_s25 }
  0x1c   : > { %p2089_p5 = pnand %p2087_p4, %p2075_p11  ;;  %p2095_p12 = scmp.lt.s32.totalorder %s2093_s24, %s2086_s27 }
  0x1e   : > { %p2090_p6 = pneg %p2089_p5  ;;  %p2096_p9 = por %p2095_p12, %p2094_p10 }
  0x20   : > { %p2097_p7 = pnand %p2096_p9, %p2090_p6 }
  0x22   : > { %2100 = shalt.err (!%p2097_p7)
}
  0x23   : > { %s2138_s23 = smov 64   ;;  %s2139_s29 = smov 4  }
  0x24   : > { %1976 = dma.hbm_to_vmem [thread:$0]  (!%p2252_p8), %s2248_s13, 1024, %s2250_s15, %s2257_s17, %s2138_s23, %s2138_s23, %s2139_s29  }
  0x25   : > { %p367_p11 = scmp.lt.s32.totalorder %s2135_s20, 4  ;;  %p2568_p13 = scmp.ge.s32.totalorder %s2135_s20, 1 }
  0x27   : > { %p368_p0 = pnand %p2568_p13, %p367_p11 }
  0x28   : > { %s373_s25 = sand.u32 (!%p368_p0), 1, %s2127_s18   ;;  %p2569_p7 = scmp.ne.s32.totalorder (!%p368_p0), %s2566_s26, 0 }
  0x29   : > { %371 = sbr.rel (%p368_p0) target bundleno = 1690 (0x69a), region = 64  ;;  %s1580_s28 = sshll.u32 (!%p368_p0), %s373_s25, 6 }
  0x2a   : > { %s374_s30 = scalar_lea.sflag (!%p368_p0), [#allocation4], %s373_s25  ;;  %s2282_s12 = scalar_lea.vmem (!%p368_p0), [#allocation3], %s1580_s28 }
  0x2e   : > { %2118 = dma.done.wait (%p2569_p7), %s374_s30, 1024  }
  0x2f   : > { %2120 = vsyncadd (%p2569_p7), %s374_s30, 4294966272  ;;  %p420_p9 = scmp.lt.s32.totalorder %s2222_s21, 2  ;;  %p1584_p8 = scmp.ne.s32.totalorder %s2222_s21, 0 }
  0x31   : > { %s421_s13 = scalar_select %p420_p9, %s2222_s21, 2 }
  0x32   : > { %433 = sbr.rel (%p1584_p8) target bundleno = 60 (0x3c), region = 72 }
  0x33   : > { %s1660_s15 = sshll.u32 %s421_s13, 6  ;;  %s1583_s20 = sshll.u32 %s421_s13, 3 }
  0x34   : > { %s2293_s27 = scalar_lea.vmem %s2556_s4, %s1660_s15  ;;  %s2298_s23 = scalar_lea.vmem %s2558_s6, %s1583_s20 }
  0x37   : > { %v434_v0 = vld [vmem:[%s2553_s1] sm:$0xff]   ;;  %v436_v1 = vld [vmem:[%s2553_s1 + $0x8] sm:$0xff]   ;;  %v438_v2 = vld [vmem:[%s2553_s1 + $0x10] sm:$0xff]  }
  0x38   : > { %450 = vst [vmem:[#allocation2] sm:$0xff] %v434_v0   ;;  %452 = vst [vmem:[#allocation2 + $0x8] sm:$0xff] %v436_v1   ;;  %v440_v3 = vld [vmem:[%s2553_s1 + $0x18] sm:$0xff]   ;;  %v442_v4 = vld [vmem:[%s2553_s1 + $0x20] sm:$0xff]  }
  0x39   : > { %454 = vst [vmem:[#allocation2 + $0x10] sm:$0xff] %v438_v2   ;;  %v444_v5 = vld [vmem:[%s2553_s1 + $0x28] sm:$0xff]   ;;  %456 = vst [vmem:[#allocation2 + $0x18] sm:$0xff] %v440_v3   ;;  %v446_v6 = vld [vmem:[%s2553_s1 + $0x30] sm:$0xff]  }
  0x3a   : > { %458 = vst [vmem:[#allocation2 + $0x20] sm:$0xff] %v442_v4   ;;  %460 = vst [vmem:[#allocation2 + $0x28] sm:$0xff] %v444_v5   ;;  %v448_v7 = vld [vmem:[%s2553_s1 + $0x38] sm:$0xff]  }
  0x3b   : > { %462 = vst [vmem:[#allocation2 + $0x30] sm:$0xff] %v446_v6   ;;  %464 = vst [vmem:[#allocation2 + $0x38] sm:$0xff] %v448_v7  }
  0x3c PF: > { %v2023_v12 = vld [vmem:[%s2552_s0] sm:$0xff]   ;;  %v2031_v15 = vld [vmem:[%s2293_s27 + $0x38] sm:$0xff]   ;;  %v2032_v16 = vld [vmem:[%s2293_s27 + $0x30] sm:$0xff]   ;;  %p1637_p1 = scmp.ne.s32.totalorder %s2222_s21, 2 }
  0x3d   : > { %1815 = vmatprep.mubr.bf16.mxu0 %v2023_v12  ;;  %1831 = vmatprep.subr.bf16.mxu1 %v2031_v15  ;;  %v2033_v18 = vld [vmem:[%s2293_s27 + $0x28] sm:$0xff]   ;;  %v2034_v20 = vld [vmem:[%s2293_s27 + $0x20] sm:$0xff]   ;;  %v2035_v21 = vld [vmem:[%s2293_s27 + $0x18] sm:$0xff]  }
  0x3e   : > { %1832 = vmatpush3.bf16.msra.mxu1 %v2031_v15  ;;  %v2024_v22 = vld [vmem:[%s2552_s0 + $0x8] sm:$0xff]   ;;  %v2025_v23 = vld [vmem:[%s2552_s0 + $0x10] sm:$0xff]   ;;  %v2026_v25 = vld [vmem:[%s2552_s0 + $0x18] sm:$0xff]  }
  0x3f   : > { %v2021_v17 = vld [vmem:[#allocation2 + $0x8] sm:$0xff]   ;;  %1833 = vmatprep.subr.bf16.mxu1 %v2032_v16  ;;  %v2022_v19 = vld [vmem:[#allocation2] sm:$0xff]   ;;  %v2036_v24 = vld [vmem:[%s2293_s27 + $0x10] sm:$0xff]  }
  0x40   : > { %v2019_v13 = vld [vmem:[#allocation2 + $0x18] sm:$0xff]   ;;  %v2020_v14 = vld [vmem:[#allocation2 + $0x10] sm:$0xff]   ;;  %v2027_v26 = vld [vmem:[%s2552_s0 + $0x20] sm:$0xff]  }
  0x41   : > { %v2017_v10 = vld [vmem:[#allocation2 + $0x28] sm:$0xff]   ;;  %v2018_v11 = vld [vmem:[#allocation2 + $0x20] sm:$0xff]   ;;  %v2029_v28 = vld [vmem:[%s2552_s0 + $0x30] sm:$0xff]  }
  0x42   : > { %v2015_v8 = vld [vmem:[#allocation2 + $0x38] sm:$0xff]   ;;  %v2016_v9 = vld [vmem:[#allocation2 + $0x30] sm:$0xff]   ;;  %1834 = vmatpush3.bf16.msra.mxu1 %v2032_v16  ;;  %v2028_v27 = vld [vmem:[%s2552_s0 + $0x28] sm:$0xff]  }
  0x43   : > { %1799 = vmatprep.subr.bf16.mxu0 %v2015_v8  ;;  %1835 = vmatprep.subr.bf16.mxu1 %v2033_v18  ;;  %v2030_v29 = vld [vmem:[%s2552_s0 + $0x38] sm:$0xff]   ;;  %v2037_v30 = vld [vmem:[%s2293_s27 + $0x8] sm:$0xff]   ;;  %v2038_v31 = vld [vmem:[%s2293_s27] sm:$0xff]  }
  0x44   : > { %1800 = vmatpush3.bf16.msra.mxu0 %v2015_v8  ;;  %v2039_v32 = vld [vmem:[%s2282_s12 + $0x38] sm:$0xff]   ;;  %v2040_v33 = vld [vmem:[%s2282_s12 + $0x30] sm:$0xff]   ;;  %v2041_v34 = vld [vmem:[%s2282_s12 + $0x28] sm:$0xff]  }
  0x45   : > { %1801 = vmatprep.subr.bf16.mxu0 %v2016_v9  ;;  %v2042_v35 = vld [vmem:[%s2282_s12 + $0x20] sm:$0xff]   ;;  %v2043_v36 = vld [vmem:[%s2282_s12 + $0x18] sm:$0xff]   ;;  %v2044_v61 = vld [vmem:[%s2282_s12 + $0x10] sm:$0xff]  }
  0x46   : > { %1836 = vmatpush3.bf16.msra.mxu1 %v2033_v18  ;;  %v2045_v62 = vld [vmem:[%s2282_s12 + $0x8] sm:$0xff]   ;;  %v2046_v63 = vld [vmem:[%s2282_s12] sm:$0xff]  }
  0x47   : > { %1837 = vmatprep.subr.bf16.mxu1 %v2034_v20  ;;  %v1601_v2 = vld [vmem:[%s2298_s23] ss:$0 sm:$0xff] }
  0x48   : > { %1802 = vmatpush3.bf16.msra.mxu0 %v2016_v9 }
  0x49   : > { %1803 = vmatprep.subr.bf16.mxu0 %v2017_v10 }
  0x4a   : > { %1838 = vmatpush3.bf16.msra.mxu1 %v2034_v20 }
  0x4b   : > { %1839 = vmatprep.subr.bf16.mxu1 %v2035_v21 }
  0x4c   : > { %1804 = vmatpush3.bf16.msra.mxu0 %v2017_v10 }
  0x4d   : > { %1805 = vmatprep.subr.bf16.mxu0 %v2018_v11 }
  0x4e   : > { %1840 = vmatpush3.bf16.msra.mxu1 %v2035_v21 }
  0x4f   : > { %1841 = vmatprep.subr.bf16.mxu1 %v2036_v24 }
  0x50   : > { %1806 = vmatpush3.bf16.msra.mxu0 %v2018_v11 }
  0x51   : > { %1807 = vmatprep.subr.bf16.mxu0 %v2019_v13 }
  0x52   : > { %1842 = vmatpush3.bf16.msra.mxu1 %v2036_v24 }
  0x53   : > { %1843 = vmatprep.subr.bf16.mxu1 %v2037_v30 }
  0x54   : > { %1808 = vmatpush3.bf16.msra.mxu0 %v2019_v13 }
  0x55   : > { %1809 = vmatprep.subr.bf16.mxu0 %v2020_v14 }
  0x56   : > { %1844 = vmatpush3.bf16.msra.mxu1 %v2037_v30 }
  0x57   : > { %1845 = vmatprep.subr.bf16.mxu1 %v2038_v31 }
  0x58   : > { %1810 = vmatpush3.bf16.msra.mxu0 %v2020_v14 }
  0x59   : > { %1811 = vmatprep.subr.bf16.mxu0 %v2021_v17 }
  0x5a   : > { %1846 = vmatpush3.bf16.msra.mxu1 %v2038_v31 }
  0x5b   : > { %1955 = vmatprep.subr.bf16.mxu1 %v2039_v32 }
  0x5c   : > { %1812 = vmatpush3.bf16.msra.mxu0 %v2021_v17 }
  0x5d   : > { %1813 = vmatprep.subr.bf16.mxu0 %v2022_v19 }
  0x60   : > { %1814 = vmatpush3.bf16.msra.mxu0 %v2022_v19 }
  0x61   : > { %1863 = vmatprep.subr.bf16.mxu0 %v2039_v32 }
  0x63   : > { %1816 = vmatmul.mubr.bf16.vlgmr.msra.gmra.mxu0 %v2024_v22 }
  0x64   : > { %1819 = vmatprep.mubr.bf16.mxu0 %v2025_v23  ;;  %1864 = vmatpush3.bf16.msra.mxu0 %v2039_v32 }
  0x65   : > { %1865 = vmatprep.subr.bf16.mxu0 %v2040_v33 }
  0x68   : > { %1866 = vmatpush3.bf16.msra.mxu0 %v2040_v33 }
  0x69   : > { %1867 = vmatprep.subr.bf16.mxu0 %v2041_v34 }
  0x6b   : > { %1820 = vmatmul.mubr.bf16.gmra.mxu0 %v2026_v25 }
  0x6c   : > { %1823 = vmatprep.mubr.bf16.mxu0 %v2027_v26  ;;  %1868 = vmatpush3.bf16.msra.mxu0 %v2041_v34 }
  0x6d   : > { %1869 = vmatprep.subr.bf16.mxu0 %v2042_v35 }
  0x70   : > { %1870 = vmatpush3.bf16.msra.mxu0 %v2042_v35 }
  0x71   : > { %1871 = vmatprep.subr.bf16.mxu0 %v2043_v36 }
  0x73   : > { %1824 = vmatmul.mubr.bf16.gmra.mxu0 %v2028_v27 }
  0x74   : > { %1827 = vmatprep.mubr.bf16.mxu0 %v2029_v28  ;;  %1872 = vmatpush3.bf16.msra.mxu0 %v2043_v36 }
  0x75   : > { %1873 = vmatprep.subr.bf16.mxu0 %v2044_v61 }
  0x78   : > { %1874 = vmatpush3.bf16.msra.mxu0 %v2044_v61 }
  0x79   : > { %1875 = vmatprep.subr.bf16.mxu0 %v2045_v62 }
  0x7b   : > { %1828 = vmatmul.mubr.bf16.gmra.mxu0 %v2030_v29 }
  0x7c   : > { %1876 = vmatpush3.bf16.msra.mxu0 %v2045_v62 }
  0x7d   : > { %1877 = vmatprep.subr.bf16.mxu0 %v2046_v63 }
  0x80   : > { %1878 = vmatpush3.bf16.msra.mxu0 %v2046_v63 }
 0x123   : > { %v1817_v37 = vpop.f32.mrf.mxu0 }
 0x125   : > { %v628_v38 = vpop.f32.mrf.mxu0 }
 0x127   : > { %v1818_v39 = vpop.f32.mrf.mxu0 }
 0x128   : > { %v692_v42 = vpack.c.bf16 %v1818_v39, %v1817_v37 }
 0x129   : > { %v631_v40 = vpop.f32.mrf.mxu0 }
 0x12a   : > { %v691_v41 = vpack.c.bf16 %v631_v40, %v628_v38 }
 0x12b   : > { %v1821_v43 = vpop.f32.mrf.mxu0 }
 0x12c   : > { %1847 = vmatprep.mubr.bf16.mxu1 %v691_v41 }
 0x12d   : > { %v644_v44 = vpop.f32.mrf.mxu0  ;;  %1848 = vmatmul.mubr.bf16.vlgmr.msra.gmra.mxu1 %v692_v42 }
 0x12e   : > { %1963 = vmatpush3.bf16.msra.mxu1 %v2039_v32 }
 0x12f   : > { %v1822_v45 = vpop.f32.mrf.mxu0  ;;  %1956 = vmatprep.subr.bf16.mxu1 %v2040_v33 }
 0x130   : > { %v694_v48 = vpack.c.bf16 %v1822_v45, %v1821_v43 }
 0x131   : > { %v647_v46 = vpop.f32.mrf.mxu0 }
 0x132   : > { %v693_v47 = vpack.c.bf16 %v647_v46, %v644_v44  ;;  %1964 = vmatpush3.bf16.msra.mxu1 %v2040_v33 }
 0x133   : > { %v1825_v49 = vpop.f32.mrf.mxu0  ;;  %1957 = vmatprep.subr.bf16.mxu1 %v2041_v34 }
 0x134   : > { %1851 = vmatprep.mubr.bf16.mxu1 %v693_v47 }
 0x135   : > { %v660_v50 = vpop.f32.mrf.mxu0  ;;  %1852 = vmatmul.mubr.bf16.gmra.mxu1 %v694_v48 }
 0x136   : > { %1965 = vmatpush3.bf16.msra.mxu1 %v2041_v34 }
 0x137   : > { %v1826_v51 = vpop.f32.mrf.mxu0  ;;  %1958 = vmatprep.subr.bf16.mxu1 %v2042_v35 }
 0x138   : > { %v696_v54 = vpack.c.bf16 %v1826_v51, %v1825_v49 }
 0x139   : > { %v663_v52 = vpop.f32.mrf.mxu0 }
 0x13a   : > { %v695_v53 = vpack.c.bf16 %v663_v52, %v660_v50  ;;  %1966 = vmatpush3.bf16.msra.mxu1 %v2042_v35 }
 0x13b   : > { %v1829_v55 = vpop.f32.mrf.mxu0  ;;  %1959 = vmatprep.subr.bf16.mxu1 %v2043_v36 }
 0x13c   : > { %1855 = vmatprep.mubr.bf16.mxu1 %v695_v53 }
 0x13d   : > { %v676_v56 = vpop.f32.mrf.mxu0  ;;  %1856 = vmatmul.mubr.bf16.gmra.mxu1 %v696_v54 }
 0x13e   : > { %1967 = vmatpush3.bf16.msra.mxu1 %v2043_v36 }
 0x13f   : > { %v1830_v57 = vpop.f32.mrf.mxu0  ;;  %1960 = vmatprep.subr.bf16.mxu1 %v2044_v61 }
 0x140   : > { %v698_v60 = vpack.c.bf16 %v1830_v57, %v1829_v55  ;;  %v2367_v57 = vld [vmem:[%s2298_s23 + $0x1] ss:$0 sm:$0xff] }
 0x141   : > { %v679_v58 = vpop.f32.mrf.mxu0 }
 0x142   : > { %v697_v59 = vpack.c.bf16 %v679_v58, %v676_v56  ;;  %1968 = vmatpush3.bf16.msra.mxu1 %v2044_v61 }
 0x143   : > { %1961 = vmatprep.subr.bf16.mxu1 %v2045_v62 }
 0x144   : > { %1859 = vmatprep.mubr.bf16.mxu1 %v697_v59 }
 0x145   : > { %1860 = vmatmul.mubr.bf16.gmra.mxu1 %v698_v60 }
 0x146   : > { %1969 = vmatpush3.bf16.msra.mxu1 %v2045_v62 }
 0x147   : > { %1962 = vmatprep.subr.bf16.mxu1 %v2046_v63 }
 0x14a   : > { %1970 = vmatpush3.bf16.msra.mxu1 %v2046_v63  ;;  %v2372_v63 = vld [vmem:[%s2298_s23 + $0x2] ss:$0 sm:$0xff] }
 0x1ed   : > { %v1849_v0 = vpop.f32.mrf.mxu1 }
 0x1ee   : > { %v811_v6 = vadd.f32 %v1849_v0, %v1601_v2 }
 0x1ef   : > { %v802_v1 = vpop.f32.mrf.mxu1 }
 0x1f0   : > { %v803_v4 = vadd.f32 %v1601_v2, %v802_v1  ;;  %v867_v13 = vmax.f32 %v811_v6, 0.0 }
 0x1f1   : > { %v1850_v3 = vpop.f32.mrf.mxu1 }
 0x1f2   : > { %v814_v5 = vadd.f32 %v1850_v3, %v1601_v2  ;;  %v865_v11 = vmax.f32 %v803_v4, 0.0 }
 0x1f3   : > { %v805_v7 = vpop.f32.mrf.mxu1 }
 0x1f4   : > { %v806_v8 = vadd.f32 %v1601_v2, %v805_v7  ;;  %v868_v9 = vmax.f32 %v814_v5, 0.0  ;;  %v2378_v7 = vld [vmem:[%s2298_s23 + $0x3] ss:$0 sm:$0xff] }
 0x1f5   : > { %v1853_v10 = vpop.f32.mrf.mxu1 }
 0x1f6   : > { %v866_v12 = vmax.f32 %v806_v8, 0.0  ;;  %v882_v16 = vpack.c.bf16 %v868_v9, %v867_v13  ;;  %v827_v20 = vadd.f32 %v1853_v10, %v1601_v2 }
 0x1f7   : > { %v818_v14 = vpop.f32.mrf.mxu1 }
 0x1f8   : > { %v881_v15 = vpack.c.bf16 %v866_v12, %v865_v11  ;;  %v819_v18 = vadd.f32 %v1601_v2, %v818_v14  ;;  %v871_v27 = vmax.f32 %v827_v20, 0.0 }
 0x1f9   : > { %v1854_v17 = vpop.f32.mrf.mxu1 }
 0x1fa   : > { %v830_v19 = vadd.f32 %v1854_v17, %v1601_v2  ;;  %1879 = vmatprep.mubr.bf16.mxu0 %v881_v15  ;;  %v869_v25 = vmax.f32 %v819_v18, 0.0 }
 0x1fb   : > { %v821_v21 = vpop.f32.mrf.mxu1  ;;  %1880 = vmatmul.mubr.bf16.vlgmr.msra.gmra.mxu0 %v882_v16 }
 0x1fc   : > { %v822_v22 = vadd.f32 %v1601_v2, %v821_v21  ;;  %v872_v23 = vmax.f32 %v830_v19, 0.0 }
 0x1fd   : > { %v1857_v24 = vpop.f32.mrf.mxu1 }
 0x1fe   : > { %v870_v26 = vmax.f32 %v822_v22, 0.0  ;;  %v884_v30 = vpack.c.bf16 %v872_v23, %v871_v27  ;;  %v843_v34 = vadd.f32 %v1857_v24, %v1601_v2 }
 0x1ff   : > { %v834_v28 = vpop.f32.mrf.mxu1 }
 0x200   : > { %v883_v29 = vpack.c.bf16 %v870_v26, %v869_v25  ;;  %v835_v32 = vadd.f32 %v1601_v2, %v834_v28  ;;  %v875_v41 = vmax.f32 %v843_v34, 0.0 }
 0x201   : > { %v1858_v31 = vpop.f32.mrf.mxu1 }
 0x202   : > { %v846_v33 = vadd.f32 %v1858_v31, %v1601_v2  ;;  %1883 = vmatprep.mubr.bf16.mxu0 %v883_v29  ;;  %v873_v39 = vmax.f32 %v835_v32, 0.0 }
 0x203   : > { %v837_v35 = vpop.f32.mrf.mxu1  ;;  %1884 = vmatmul.mubr.bf16.gmra.mxu0 %v884_v30 }
 0x204   : > { %v838_v36 = vadd.f32 %v1601_v2, %v837_v35  ;;  %v876_v37 = vmax.f32 %v846_v33, 0.0 }
 0x205   : > { %v1861_v38 = vpop.f32.mrf.mxu1 }
 0x206   : > { %v874_v40 = vmax.f32 %v838_v36, 0.0  ;;  %v886_v44 = vpack.c.bf16 %v876_v37, %v875_v41  ;;  %v859_v48 = vadd.f32 %v1861_v38, %v1601_v2 }
 0x207   : > { %v850_v42 = vpop.f32.mrf.mxu1 }
 0x208   : > { %v885_v43 = vpack.c.bf16 %v874_v40, %v873_v39  ;;  %v851_v46 = vadd.f32 %v1601_v2, %v850_v42  ;;  %v879_v54 = vmax.f32 %v859_v48, 0.0 }
 0x209   : > { %v1862_v45 = vpop.f32.mrf.mxu1 }
 0x20a   : > { %v862_v47 = vadd.f32 %v1862_v45, %v1601_v2  ;;  %1887 = vmatprep.mubr.bf16.mxu1 %v885_v43  ;;  %v877_v52 = vmax.f32 %v851_v46, 0.0 }
 0x20b   : > { %v853_v49 = vpop.f32.mrf.mxu1  ;;  %1888 = vmatmul.mubr.bf16.vlgmr.msra.gmra.mxu1 %v886_v44 }
 0x20c   : > { %v854_v50 = vadd.f32 %v1601_v2, %v853_v49  ;;  %v880_v51 = vmax.f32 %v862_v47, 0.0 }
 0x20e   : > { %v878_v53 = vmax.f32 %v854_v50, 0.0  ;;  %v888_v56 = vpack.c.bf16 %v880_v51, %v879_v54 }
 0x210   : > { %v887_v55 = vpack.c.bf16 %v878_v53, %v877_v52 }
 0x212   : > { %1891 = vmatprep.mubr.bf16.mxu1 %v887_v55 }
 0x213   : > { %1892 = vmatmul.mubr.bf16.gmra.mxu1 %v888_v56 }
 0x2bb   : > { %v1881_v58 = vpop.f32.mrf.mxu0 }
 0x2bc   : > { %v1001_v59 = vadd.f32 %v1881_v58, %v2367_v57 }
 0x2bd   : > { %v992_v60 = vpop.f32.mrf.mxu0 }
 0x2be   : > { %v1057_v61 = vmax.f32 %v1001_v59, 0.0  ;;  %v993_v62 = vadd.f32 %v2367_v57, %v992_v60 }
 0x2bf   : > { %v1882_v0 = vpop.f32.mrf.mxu0 }
 0x2c0   : > { %v1055_v1 = vmax.f32 %v993_v62, 0.0  ;;  %v1004_v2 = vadd.f32 %v1882_v0, %v2367_v57  ;;  %v1078_v4 = vmul.f32 %v2372_v63, %v1057_v61 }
 0x2c1   : > { %v995_v3 = vpop.f32.mrf.mxu0 }
 0x2c2   : > { %v1058_v5 = vmax.f32 %v1004_v2, 0.0  ;;  %v996_v6 = vadd.f32 %v2367_v57, %v995_v3  ;;  %v1076_v9 = vmul.f32 %v2372_v63, %v1055_v1  ;;  %v1099_v14 = vadd.f32 %v2378_v7, %v1078_v4 }
 0x2c3   : > { %v1885_v8 = vpop.f32.mrf.mxu0 }
 0x2c4   : > { %v1079_v10 = vmul.f32 %v2372_v63, %v1058_v5  ;;  %v1056_v11 = vmax.f32 %v996_v6, 0.0  ;;  %v1017_v12 = vadd.f32 %v1885_v8, %v2367_v57  ;;  %v1097_v20 = vadd.f32 %v2378_v7, %v1076_v9 }
 0x2c5   : > { %v1008_v13 = vpop.f32.mrf.mxu0 }
 0x2c6   : > { %v1100_v15 = vadd.f32 %v2378_v7, %v1079_v10  ;;  %v1077_v16 = vmul.f32 %v2372_v63, %v1056_v11  ;;  %v1009_v17 = vadd.f32 %v2367_v57, %v1008_v13  ;;  %v1061_v18 = vmax.f32 %v1017_v12, 0.0 }
 0x2c7   : > { %v1886_v19 = vpop.f32.mrf.mxu0 }
 0x2c8   : > { %v2388_v21 = vpack.c.bf16 %v1100_v15, %v1099_v14  ;;  %v1098_v22 = vadd.f32 %v2378_v7, %v1077_v16  ;;  %v1059_v23 = vmax.f32 %v1009_v17, 0.0  ;;  %v1020_v24 = vadd.f32 %v1886_v19, %v2367_v57 }
 0x2c9   : > { %v1011_v25 = vpop.f32.mrf.mxu0  ;;  %v1082_v28 = vmul.f32 %v2372_v63, %v1061_v18 }
 0x2ca   : > { %1717 = vst [vmem:[#allocation2 + $0x8] sm:$0xff] %v2388_v21   ;;  %v2393_v26 = vpack.c.bf16 %v1098_v22, %v1097_v20  ;;  %v1012_v27 = vadd.f32 %v2367_v57, %v1011_v25  ;;  %v1062_v29 = vmax.f32 %v1020_v24, 0.0  ;;  %v1080_v31 = vmul.f32 %v2372_v63, %v1059_v23 }
 0x2cb   : > { %v1889_v30 = vpop.f32.mrf.mxu1  ;;  %v1103_v39 = vadd.f32 %v2378_v7, %v1082_v28 }
 0x2cc   : > { %1681 = vst [vmem:[#allocation2] sm:$0xff] %v2393_v26   ;;  %v1060_v32 = vmax.f32 %v1012_v27, 0.0  ;;  %v1033_v33 = vadd.f32 %v1889_v30, %v2367_v57  ;;  %v1083_v34 = vmul.f32 %v2372_v63, %v1062_v29  ;;  %v1101_v42 = vadd.f32 %v2378_v7, %v1080_v31 }
 0x2cd   : > { %v1024_v35 = vpop.f32.mrf.mxu1 }
 0x2ce   : > { %v1081_v36 = vmul.f32 %v2372_v63, %v1060_v32  ;;  %v1065_v37 = vmax.f32 %v1033_v33, 0.0  ;;  %v1025_v38 = vadd.f32 %v2367_v57, %v1024_v35  ;;  %v1104_v40 = vadd.f32 %v2378_v7, %v1083_v34 }
 0x2cf   : > { %v1890_v41 = vpop.f32.mrf.mxu1 }
 0x2d0   : > { %v1102_v43 = vadd.f32 %v2378_v7, %v1081_v36  ;;  %v1036_v44 = vadd.f32 %v1890_v41, %v2367_v57  ;;  %v2408_v45 = vpack.c.bf16 %v1104_v40, %v1103_v39  ;;  %v1063_v46 = vmax.f32 %v1025_v38, 0.0 }
 0x2d1   : > { %v1027_v47 = vpop.f32.mrf.mxu1  ;;  %v1086_v49 = vmul.f32 %v2372_v63, %v1065_v37 }
 0x2d2   : > { %v2410_v48 = vpack.c.bf16 %v1102_v43, %v1101_v42  ;;  %v1066_v50 = vmax.f32 %v1036_v44, 0.0  ;;  %1719 = vst [vmem:[#allocation2 + $0x18] sm:$0xff] %v2408_v45   ;;  %v1028_v51 = vadd.f32 %v2367_v57, %v1027_v47  ;;  %v1084_v55 = vmul.f32 %v2372_v63, %v1063_v46 }
 0x2d3   : > { %v1893_v52 = vpop.f32.mrf.mxu1  ;;  %v1107_v59 = vadd.f32 %v2378_v7, %v1086_v49 }
 0x2d4   : > { %1718 = vst [vmem:[#allocation2 + $0x10] sm:$0xff] %v2410_v48   ;;  %v1087_v53 = vmul.f32 %v2372_v63, %v1066_v50  ;;  %v1049_v54 = vadd.f32 %v1893_v52, %v2367_v57  ;;  %v1064_v56 = vmax.f32 %v1028_v51, 0.0  ;;  %v1105_v5 = vadd.f32 %v2378_v7, %v1084_v55 }
 0x2d5   : > { %v1040_v58 = vpop.f32.mrf.mxu1 }
 0x2d6   : > { %v1108_v60 = vadd.f32 %v2378_v7, %v1087_v53  ;;  %v1069_v61 = vmax.f32 %v1049_v54, 0.0  ;;  %v1041_v62 = vadd.f32 %v2367_v57, %v1040_v58  ;;  %v1085_v0 = vmul.f32 %v2372_v63, %v1064_v56 }
 0x2d7   : > { %v1894_v1 = vpop.f32.mrf.mxu1 }
 0x2d8   : > { %v1118_v2 = vpack.c.bf16 %v1108_v60, %v1107_v59  ;;  %v1067_v3 = vmax.f32 %v1041_v62, 0.0  ;;  %v1052_v4 = vadd.f32 %v1894_v1, %v2367_v57  ;;  %v1106_v6 = vadd.f32 %v2378_v7, %v1085_v0 }
 0x2d9   : > { %v1043_v8 = vpop.f32.mrf.mxu1  ;;  %v1090_v9 = vmul.f32 %v2372_v63, %v1069_v61 }
 0x2da   : > { %1721 = vst [vmem:[#allocation2 + $0x28] sm:$0xff] %v1118_v2   ;;  %v1070_v10 = vmax.f32 %v1052_v4, 0.0  ;;  %v1044_v11 = vadd.f32 %v2367_v57, %v1043_v8  ;;  %v1117_v12 = vpack.c.bf16 %v1106_v6, %v1105_v5  ;;  %v1088_v13 = vmul.f32 %v2372_v63, %v1067_v3 }
 0x2db   : > { %v1111_v16 = vadd.f32 %v2378_v7, %v1090_v9 }
 0x2dc   : > { %v1091_v14 = vmul.f32 %v2372_v63, %v1070_v10  ;;  %v1068_v15 = vmax.f32 %v1044_v11, 0.0  ;;  %1720 = vst [vmem:[#allocation2 + $0x20] sm:$0xff] %v1117_v12   ;;  %v1109_v19 = vadd.f32 %v2378_v7, %v1088_v13 }
 0x2de   : > { %v1112_v17 = vadd.f32 %v2378_v7, %v1091_v14  ;;  %v1089_v18 = vmul.f32 %v2372_v63, %v1068_v15 }
 0x2e0   : > { %v1120_v20 = vpack.c.bf16 %v1112_v17, %v1111_v16  ;;  %v1110_v22 = vadd.f32 %v2378_v7, %v1089_v18  ;;  %1196 = sbr.rel (%p1637_p1) target bundleno = 1690 (0x69a), region = 76 }
 0x2e2   : > { %1723 = vst [vmem:[#allocation2 + $0x38] sm:$0xff] %v1120_v20   ;;  %v1119_v57 = vpack.c.bf16 %v1110_v22, %v1109_v19 }
 0x2e4   : > { %1722 = vst [vmem:[#allocation2 + $0x30] sm:$0xff] %v1119_v57  }
 0x2e5   : > { %v2140_v23 = vmov 0.0   ;;  %vm2141_vm0 = vmmov 0   ;;  %v1246_v63 = vld [vmem:[%s2555_s3] sm:$0xff]  ;;  %v2142_v24 = vmov 0   ;;  %v2049_v7 = vld [vmem:[%s2559_s7 + $0x38] sm:$0xff]   ;;  %v1247_v25 = vld [vmem:[%s2555_s3 + $0x8] sm:$0xff] }
 0x2e6   : > { %1895 = vmatprep.subr.bf16.mxu0 %v2140_v23  ;;  %1911 = vmatprep.mubr.msk.bf16.mxu0 %vm2141_vm0, %v2140_v23  ;;  %v2050_v27 = vld [vmem:[%s2559_s7 + $0x30] sm:$0xff]   ;;  %v2051_v28 = vld [vmem:[%s2559_s7 + $0x28] sm:$0xff]   ;;  %v2052_v29 = vld [vmem:[%s2559_s7 + $0x20] sm:$0xff]  }
 0x2e7   : > { %1896 = vmatpush3.bf16.msra.mxu0 %v1120_v20  ;;  %2047 = vset.pattern.permute.xlu0 %v2142_v24  ;;  %v2053_v30 = vld [vmem:[%s2559_s7 + $0x18] sm:$0xff]   ;;  %v2054_v31 = vld [vmem:[%s2559_s7 + $0x10] sm:$0xff]   ;;  %v2048_v32 = vld [vmem:[%s2554_s2] sm:$0xff]  }
 0x2e8   : > { %1897 = vmatprep.subr.bf16.mxu0 %v2140_v23  ;;  %1250 = vperm.xlu0 %2047, %v1246_v63   ;;  %v2056_v33 = vld [vmem:[%s2559_s7] sm:$0xff]   ;;  %v2058_v34 = vld [vmem:[%s2560_s8 + $0x30] sm:$0xff]   ;;  %v2059_v35 = vld [vmem:[%s2560_s8 + $0x28] sm:$0xff]  }
 0x2e9   : > { %1915 = vmatprep.subr.bf16.mxu1 %v2140_v23  ;;  %1931 = vmatprep.mubr.msk.bf16.mxu1 %vm2141_vm0, %v2140_v23  ;;  %v2060_v36 = vld [vmem:[%s2560_s8 + $0x20] sm:$0xff]   ;;  %v2061_v37 = vld [vmem:[%s2560_s8 + $0x18] sm:$0xff]   ;;  %v2062_v47 = vld [vmem:[%s2560_s8 + $0x10] sm:$0xff]  }
 0x2ea   : > { %1916 = vmatpush3.bf16.msra.mxu1 %v2049_v7  ;;  %v2064_v49 = vld [vmem:[%s2560_s8] sm:$0xff]  }
 0x2eb   : > { %1898 = vmatpush3.bf16.msra.mxu0 %v1119_v57  ;;  %1917 = vmatprep.subr.bf16.mxu1 %v2140_v23  ;;  %v1639_v50 = vld [vmem:[%s2561_s9] ss:$0 sm:$0xff] }
 0x2ec   : > { %1899 = vmatprep.subr.bf16.mxu0 %v2140_v23  ;;  %1255 = vperm.xlu0 %2047, %v1247_v25   ;;  %v1648_v61 = vld [vmem:[%s2562_s10] ss:$0 sm:$0xff] }
 0x2ee   : > { %1918 = vmatpush3.bf16.msra.mxu1 %v2050_v27 }
 0x2ef   : > { %1900 = vmatpush3.bf16.msra.mxu0 %v1118_v2  ;;  %1919 = vmatprep.subr.bf16.mxu1 %v2140_v23 }
 0x2f0   : > { %1901 = vmatprep.subr.bf16.mxu0 %v2140_v23 }
 0x2f2   : > { %1920 = vmatpush3.bf16.msra.mxu1 %v2051_v28 }
 0x2f3   : > { %1902 = vmatpush3.bf16.msra.mxu0 %v1117_v12  ;;  %1921 = vmatprep.subr.bf16.mxu1 %v2140_v23 }
 0x2f4   : > { %1903 = vmatprep.subr.bf16.mxu0 %v2140_v23 }
 0x2f6   : > { %1922 = vmatpush3.bf16.msra.mxu1 %v2052_v29 }
 0x2f7   : > { %1904 = vmatpush3.bf16.msra.mxu0 %v2408_v45  ;;  %1923 = vmatprep.subr.bf16.mxu1 %v2140_v23 }
 0x2f8   : > { %1905 = vmatprep.subr.bf16.mxu0 %v2140_v23 }
 0x2fa   : > { %1924 = vmatpush3.bf16.msra.mxu1 %v2053_v30 }
 0x2fb   : > { %1906 = vmatpush3.bf16.msra.mxu0 %v2410_v48  ;;  %1925 = vmatprep.subr.bf16.mxu1 %v2140_v23  ;;  %v2063_v48 = vld [vmem:[%s2560_s8 + $0x8] sm:$0xff]  }
 0x2fc   : > { %1907 = vmatprep.subr.bf16.mxu0 %v2140_v23 }
 0x2fe   : > { %1926 = vmatpush3.bf16.msra.mxu1 %v2054_v31 }
 0x2ff   : > { %1908 = vmatpush3.bf16.msra.mxu0 %v2388_v21  ;;  %1927 = vmatprep.subr.bf16.mxu1 %v2140_v23  ;;  %v2055_v21 = vld [vmem:[%s2559_s7 + $0x8] sm:$0xff]  }
 0x300   : > { %1909 = vmatprep.subr.bf16.mxu0 %v2140_v23 }
 0x302   : > { %1928 = vmatpush3.bf16.msra.mxu1 %v2055_v21 }
 0x303   : > { %1910 = vmatpush3.bf16.msra.mxu0 %v2393_v26  ;;  %1929 = vmatprep.subr.bf16.mxu1 %v2140_v23  ;;  %v2057_v26 = vld [vmem:[%s2560_s8 + $0x38] sm:$0xff]  }
 0x304   : > { %1935 = vmatprep.subr.bf16.mxu0 %v2140_v23 }
 0x306   : > { %1912 = vmatmul.mubr.bf16.vlgmr.msra.gmra.mxu0 %v2048_v32  ;;  %1930 = vmatpush3.bf16.msra.mxu1 %v2056_v33 }
 0x307   : > { %1951 = vmatprep.mubr.msk.bf16.mxu0 %vm2141_vm0, %v2140_v23  ;;  %1936 = vmatpush3.bf16.msra.mxu0 %v2057_v26 }
 0x308   : > { %1937 = vmatprep.subr.bf16.mxu0 %v2140_v23 }
 0x30b   : > { %1938 = vmatpush3.bf16.msra.mxu0 %v2058_v34 }
 0x30c   : > { %1939 = vmatprep.subr.bf16.mxu0 %v2140_v23 }
 0x30f   : > { %1940 = vmatpush3.bf16.msra.mxu0 %v2059_v35 }
 0x310   : > { %1941 = vmatprep.subr.bf16.mxu0 %v2140_v23 }
 0x313   : > { %1942 = vmatpush3.bf16.msra.mxu0 %v2060_v36 }
 0x314   : > { %1943 = vmatprep.subr.bf16.mxu0 %v2140_v23 }
 0x317   : > { %1944 = vmatpush3.bf16.msra.mxu0 %v2061_v37 }
 0x318   : > { %1945 = vmatprep.subr.bf16.mxu0 %v2140_v23 }
 0x31b   : > { %1946 = vmatpush3.bf16.msra.mxu0 %v2062_v47 }
 0x31c   : > { %1947 = vmatprep.subr.bf16.mxu0 %v2140_v23 }
 0x31f   : > { %1948 = vmatpush3.bf16.msra.mxu0 %v2063_v48 }
 0x320   : > { %1949 = vmatprep.subr.bf16.mxu0 %v2140_v23 }
 0x323   : > { %1950 = vmatpush3.bf16.msra.mxu0 %v2064_v49 }
 0x363   : > { %v1251_v38 = vpop.permute.xlu0 %1250 }
 0x367   : > { %v1256_v41 = vpop.permute.xlu0 %1255 }
 0x3c6   : > { %v1239_v39 = vpop.f32.mrf.mxu0 }
 0x3c7   : > { %v1258_v43 = vmul.f32 %v1251_v38, %v1239_v39 }
 0x3c8   : > { %v1913_v40 = vpop.f32.mrf.mxu0 }
 0x3ca   : > { %v1242_v42 = vpop.f32.mrf.mxu0 }
 0x3cb   : > { %v1259_v44 = vmul.f32 %v1256_v41, %v1242_v42 }
 0x3cc   : > { %v1914_v45 = vpop.f32.mrf.mxu0 }
 0x3cd   : > { %v1260_v46 = vpack.c.bf16 %v1259_v44, %v1258_v43 }
 0x3cf   : > { %1932 = vmatmul.mubr.bf16.vlgmr.msra.gmra.mxu1 %v1260_v46 }
 0x48f   : > { %v1366_v51 = vpop.f32.mrf.mxu1 }
 0x490   : > { %v1367_v53 = vadd.f32 %v1639_v50, %v1366_v51 }
 0x491   : > { %v1933_v52 = vpop.f32.mrf.mxu1 }
 0x492   : > { %v1373_v58 = vmax.f32 %v1367_v53, 0.0 }
 0x493   : > { %v1369_v54 = vpop.f32.mrf.mxu1 }
 0x494   : > { %v1370_v55 = vadd.f32 %v1639_v50, %v1369_v54 }
 0x495   : > { %v1934_v56 = vpop.f32.mrf.mxu1 }
 0x496   : > { %v1374_v59 = vmax.f32 %v1370_v55, 0.0 }
 0x498   : > { %v1375_v60 = vpack.c.bf16 %v1374_v59, %v1373_v58 }
 0x49a   : > { %1952 = vmatmul.mubr.bf16.vlgmr.msra.gmra.mxu0 %v1375_v60 }
 0x55a   : > { %v1481_v62 = vpop.f32.mrf.mxu0 }
 0x55b   : > { %v1482_v0 = vadd.f32 %v1648_v61, %v1481_v62 }
 0x55c   : > { %v1953_v1 = vpop.f32.mrf.mxu0 }
 0x55d   : > { %1488 = vmax.xlane.f32.xlu1 %v1482_v0 }
 0x55e   : > { %v1484_v2 = vpop.f32.mrf.mxu0 }
 0x55f   : > { %v1485_v3 = vadd.f32 %v1648_v61, %v1484_v2 }
 0x560   : > { %v1954_v4 = vpop.f32.mrf.mxu0 }
 0x561   : > { %1490 = vmax.xlane.f32.xlu1 %v1485_v3 }
 0x5e6   : > { %v1489_v5 = vpop.xlane.xlu1 %1488 }
 0x5e7   : > { %v1492_v6 = vsub.f32 %v1482_v0, %v1489_v5 }
 0x5e9   : > { %v1494_v8 = vmul.f32 1.442695, %v1492_v6 }
 0x5ea   : > { %v1491_v9 = vpop.xlane.xlu1 %1490 }
 0x5eb   : > { %2065 = vpow2.f32 %v1494_v8  ;;  %v1493_v10 = vsub.f32 %v1485_v3, %v1491_v9 }
 0x5ed   : > { %v1496_v11 = vmul.f32 1.442695, %v1493_v10 }
 0x5ef   : > { %2067 = vpow2.f32 %v1496_v11 }
 0x5f8   : > { %v2066_v12 = vpop.eup %2065 }
 0x5f9   : > { %1498 = vadd.xlane.f32.xlu0 %v2066_v12 }
 0x5fc   : > { %v2068_v13 = vpop.eup %2067 }
 0x5fd   : > { %1500 = vadd.xlane.f32.xlu1 %v2068_v13 }
 0x682   : > { %v1499_v14 = vpop.xlane.xlu0 %1498 }
 0x683   : > { %2069 = vlog2.f32 %v1499_v14 }
 0x686   : > { %v1501_v15 = vpop.xlane.xlu1 %1500 }
 0x687   : > { %2071 = vlog2.f32 %v1501_v15 }
 0x690   : > { %v2070_v16 = vpop.eup %2069 }
 0x691   : > { %v1503_v17 = vmul.f32 0.6931472, %v2070_v16 }
 0x693   : > { %v1506_v18 = vsub.f32 %v1492_v6, %v1503_v17 }
 0x694   : > { %v2072_v19 = vpop.eup %2071 }
 0x695   : > { %1508 = vst [vmem:[%s2563_s11] sm:$0xff] %v1506_v18  ;;  %v1505_v20 = vmul.f32 0.6931472, %v2072_v19 }
 0x697   : > { %v1507_v22 = vsub.f32 %v1493_v10, %v1505_v20 }
 0x699   : > { %1509 = vst [vmem:[%s2563_s11 + $0x8] sm:$0xff] %v1507_v22 }
 0x69a PF: > { %s2570_s15 = sld [smem:[#allocation6_spill]]  ;;  %p21_p2 = scmp.ge.s32.totalorder %s2225_s22, 5  }
 0x69b   : > { %s2571_s17 = smov %s2127_s18  ;;  %s2572_s18 = smov %s2131_s19 }
 0x69c   : > { %s2574_s20 = smov %s2225_s22  ;;  %23 = sbr.rel (!%p21_p2) target bundleno = 3 (0x3), region = 114 }
 0x6a0   : > { %s2573_s19 = smov %s2570_s15 }
 0x6a1   :  { %1521 = vsyncpa [#allocation4], 1 }
 0x6a2   :  { %1523 = vsyncpa [#allocation4 + $0x1], 1 }

</bundles_post_ra>
